<compile_context>
chip_gen: v6e
topology: v6e:2x2x1
jax: 0.10.0
libtpu: 0.0.40
codegen_flags: <defaults>
</compile_context>

<pallas_src>
import jax
import jax.numpy as jnp
from jax.experimental import pallas as pl
from jax.experimental.pallas import tpu as pltpu

IN_DIM = 50 * 4 * 4      # 800
H_DIM = 100
OUT_DIM = 10
H_PAD = 128              # lane-dense hidden width
OUT_PAD = 128            # lane-dense output width (sliced to 10 outside)
BN_EPS = 1e-5
MAX_TILE_B = 4096        # big batch tile; overhead amortization (HBM-bound)
MIN_SPLIT_B = 128        # split into >=2 tiles once batch >= 2*this (v7x TCs)
VMEM_LIMIT = 48 << 20    # fits 2x f32 x tiles @4096 rows; < v7x 64 MiB physical


def predictor_kernel(x_ref, w1_ref, b1_ref, w2_ref, b2_ref, w3_ref, b3_ref,
                     o_ref):
    # fc1 (+ folded bn1) + relu -- x cast to bf16 in-kernel (no HBM round-trip),
    # f32 accumulate, f32 bias/relu on the VPU path (v5e has no bf16 VPU).
    x_bf = x_ref[...].astype(jnp.bfloat16)
    h1 = jnp.dot(x_bf, w1_ref[...], preferred_element_type=jnp.float32)
    h1 = jnp.maximum(h1 + b1_ref[...], 0.0)

    # fc2 (+ folded bn2) + relu
    h2 = jnp.dot(h1.astype(jnp.bfloat16), w2_ref[...],
                 preferred_element_type=jnp.float32)
    h2 = jnp.maximum(h2 + b2_ref[...], 0.0)

    # fc3 (no bn / relu on the output, matching forward())
    h3 = jnp.dot(h2.astype(jnp.bfloat16), w3_ref[...],
                 preferred_element_type=jnp.float32)
    o_ref[...] = (h3 + b3_ref[...]).astype(o_ref.dtype)


def _round_up(v, m):
    return ((v + m - 1) // m) * m


def _pick_batch_tiling(B):
    """Near-equal batch tiles covering round_up(B, 8); >=2 tiles for big B."""
    b8 = _round_up(max(B, 1), 8)
    num_tiles = -(-b8 // MAX_TILE_B)                  # ceil div
    if num_tiles == 1 and b8 >= 2 * MIN_SPLIT_B:
        num_tiles = 2                                 # shard across v7x's 2 TCs
    tile_b = _round_up(-(-b8 // num_tiles), 8)
    b_pad = tile_b * num_tiles                        # <= b8 + 8*num_tiles - 8
    return b_pad, tile_b, num_tiles


def predictor_forward(x, folded):
    """x: (B, 800) float32. folded: dict from fold_params() (padded, bf16 W).

    Returns (B, 10) bf16 logits. Call under jit with the consumer so the
    trailing slice fuses instead of re-reading the padded output from HBM.
    """
    B = x.shape[0]
    b_pad, tile_b, num_tiles = _pick_batch_tiling(B)
    if b_pad != B:
        x = jnp.pad(x, ((0, b_pad - B), (0, 0)))      # stays f32; no cast op

    grid = (num_tiles,)

    in_specs = [
        pl.BlockSpec((tile_b, IN_DIM), lambda i: (i, 0)),    # x   (batch tiled)
        pl.BlockSpec((IN_DIM, H_PAD), lambda i: (0, 0)),     # w1  (resident)
        pl.BlockSpec((1, H_PAD), lambda i: (0, 0)),          # b1
        pl.BlockSpec((H_PAD, H_PAD), lambda i: (0, 0)),      # w2
        pl.BlockSpec((1, H_PAD), lambda i: (0, 0)),          # b2
        pl.BlockSpec((H_PAD, OUT_PAD), lambda i: (0, 0)),    # w3
        pl.BlockSpec((1, OUT_PAD), lambda i: (0, 0)),        # b3
    ]
    out_spec = pl.BlockSpec((tile_b, OUT_PAD), lambda i: (i, 0))

    out = pl.pallas_call(
        predictor_kernel,
        out_shape=jax.ShapeDtypeStruct((b_pad, OUT_PAD), jnp.bfloat16),
        grid_spec=pltpu.PrefetchScalarGridSpec(
            num_scalar_prefetch=0,
            grid=grid,
            in_specs=in_specs,
            out_specs=out_spec,
        ),
        compiler_params=pltpu.CompilerParams(
            dimension_semantics=("parallel",),
            vmem_limit_bytes=VMEM_LIMIT),
    )(x, folded["w1"], folded["b1"], folded["w2"], folded["b2"],
      folded["w3"], folded["b3"])

    return out[:B, :OUT_DIM]


def fold_params(raw):
    """Fold eval-mode BatchNorm into the linear layers and zero-pad to
    lane-dense widths. Weights in bf16 (MXU inputs); biases stay f32."""
    def bn_affine(g, b, m, v):
        scale = g / jnp.sqrt(v + BN_EPS)
        shift = b - m * scale
        return scale, shift

    s1, t1 = bn_affine(raw["g1"], raw["be1"], raw["m1"], raw["v1"])
    s2, t2 = bn_affine(raw["g2"], raw["be2"], raw["m2"], raw["v2"])

    w1 = raw["w1"] * s1                     # (800, 100) * (1, 100)
    b1 = raw["b1"] * s1 + t1
    w2 = raw["w2"] * s2
    b2 = raw["b2"] * s2 + t2
    w3 = raw["w3"]
    b3 = raw["b3"]

    def pad_w(w, out_pad, in_pad=None):
        fi, fo = w.shape
        in_tgt = fi if in_pad is None else in_pad
        return jnp.pad(w, ((0, in_tgt - fi), (0, out_pad - fo)))

    def pad_b(b, out_pad):
        return jnp.pad(b, ((0, 0), (0, out_pad - b.shape[1])))

    bf16, f32 = jnp.bfloat16, jnp.float32
    return dict(
        w1=pad_w(w1, H_PAD).astype(bf16),                  # (800, 128)
        b1=pad_b(b1, H_PAD).astype(f32),                   # (1, 128)
        w2=pad_w(w2, H_PAD, in_pad=H_PAD).astype(bf16),    # (128, 128)
        b2=pad_b(b2, H_PAD).astype(f32),                   # (1, 128)
        w3=pad_w(w3, OUT_PAD, in_pad=H_PAD).astype(bf16),  # (128, 128)
        b3=pad_b(b3, OUT_PAD).astype(f32),                 # (1, 128)
    )


def init_raw_params(key):
    """Raw (unfolded) Linear + BatchNorm parameters, PyTorch-like init."""
    ks = jax.random.split(key, 14)
    f32 = jnp.float32

    def lin(kw, kb, fan_in, fan_out):
        bound = 1.0 / jnp.sqrt(f32(fan_in))
        w = jax.random.uniform(kw, (fan_in, fan_out), f32, -bound, bound)
        b = jax.random.uniform(kb, (1, fan_out), f32, -bound, bound)
        return w, b

    def bn(kg, kb, km, kv, dim):
        g = 1.0 + 0.1 * jax.random.normal(kg, (1, dim), f32)
        be = 0.1 * jax.random.normal(kb, (1, dim), f32)
        m = 0.1 * jax.random.normal(km, (1, dim), f32)
        v = jnp.abs(jax.random.normal(kv, (1, dim), f32)) + 0.5
        return g, be, m, v

    w1, b1 = lin(ks[0], ks[1], IN_DIM, H_DIM)
    w2, b2 = lin(ks[2], ks[3], H_DIM, H_DIM)
    w3, b3 = lin(ks[4], ks[5], H_DIM, OUT_DIM)
    g1, be1, m1, v1 = bn(ks[6], ks[7], ks[8], ks[9], H_DIM)
    g2, be2, m2, v2 = bn(ks[10], ks[11], ks[12], ks[13], H_DIM)

    return dict(w1=w1, b1=b1, w2=w2, b2=b2, w3=w3, b3=b3,
                g1=g1, be1=be1, m1=m1, v1=v1,
                g2=g2, be2=be2, m2=m2, v2=v2)


def predictor_ref(x, raw):
    """Pure-f32 reference with unfolded BN (true module eval semantics)."""
    def bn(h, g, be, m, v):
        return (h - m) / jnp.sqrt(v + BN_EPS) * g + be

    h1 = jnp.maximum(bn(x @ raw["w1"] + raw["b1"],
                        raw["g1"], raw["be1"], raw["m1"], raw["v1"]), 0.0)
    h2 = jnp.maximum(bn(h1 @ raw["w2"] + raw["b2"],
                        raw["g2"], raw["be2"], raw["m2"], raw["v2"]), 0.0)
    return h2 @ raw["w3"] + raw["b3"]


if __name__ == "__main__":
    key = jax.random.PRNGKey(0)
    kx, kp = jax.random.split(key)
    B = 8
    x = jax.random.normal(kx, (B, IN_DIM), jnp.float32)

    raw = init_raw_params(kp)
    folded = fold_params(raw)

    # jit the wrapper so the pad / trailing [:B,:10] slice fuse with the call.
    fwd = jax.jit(predictor_forward)
    out = fwd(x, folded)
    out = jax.block_until_ready(out)

    ref = predictor_ref(x, raw)
    assert out.shape == (B, OUT_DIM), out.shape
    max_err = float(jnp.max(jnp.abs(out.astype(jnp.float32) - ref)))
    assert jnp.allclose(out.astype(jnp.float32), ref, atol=5e-2, rtol=5e-2), max_err
    print("KERNEL_OK")
</pallas_src>

<mosaic_0001>
module attributes {stable_mosaic.version = 11 : i64} {
  func.func @predictor_kernel(%arg0: i32, %arg1: memref<8x800xf32, #tpu.memory_space<vmem>>, %arg2: memref<800x128xbf16, #tpu.memory_space<vmem>>, %arg3: memref<1x128xf32, #tpu.memory_space<vmem>>, %arg4: memref<128x128xbf16, #tpu.memory_space<vmem>>, %arg5: memref<1x128xf32, #tpu.memory_space<vmem>>, %arg6: memref<128x128xbf16, #tpu.memory_space<vmem>>, %arg7: memref<1x128xf32, #tpu.memory_space<vmem>>, %arg8: memref<8x128xbf16, #tpu.memory_space<vmem>>) attributes {dimension_semantics = [#tpu.dimension_semantics<parallel>], iteration_bounds = array<i64: 1>, scalar_prefetch = 0 : i64, scratch_operands = 0 : i64, tpu.core_type = #tpu.core_type<tc>, window_params = [{transform_indices = @transform_0, window_bounds = array<i64: 8, 800>}, {pipeline_mode = #tpu.pipeline_mode<synchronous>, transform_indices = @transform_1, window_bounds = array<i64: 800, 128>}, {pipeline_mode = #tpu.pipeline_mode<synchronous>, transform_indices = @transform_2, window_bounds = array<i64: 1, 128>}, {pipeline_mode = #tpu.pipeline_mode<synchronous>, transform_indices = @transform_3, window_bounds = array<i64: 128, 128>}, {pipeline_mode = #tpu.pipeline_mode<synchronous>, transform_indices = @transform_4, window_bounds = array<i64: 1, 128>}, {pipeline_mode = #tpu.pipeline_mode<synchronous>, transform_indices = @transform_5, window_bounds = array<i64: 128, 128>}, {pipeline_mode = #tpu.pipeline_mode<synchronous>, transform_indices = @transform_6, window_bounds = array<i64: 1, 128>}, {transform_indices = @transform_7, window_bounds = array<i64: 8, 128>}]} {
    %c0 = arith.constant 0 : index
    %c0_0 = arith.constant 0 : index
    %0 = vector.load %arg1[%c0, %c0_0] : memref<8x800xf32, #tpu.memory_space<vmem>>, vector<8x800xf32>
    %1 = arith.truncf %0 : vector<8x800xf32> to vector<8x800xbf16>
    %c0_1 = arith.constant 0 : index
    %c0_2 = arith.constant 0 : index
    %2 = vector.load %arg2[%c0_1, %c0_2] : memref<800x128xbf16, #tpu.memory_space<vmem>>, vector<800x128xbf16>
    %cst = arith.constant dense<0.000000e+00> : vector<8x128xf32>
    %3 = tpu.matmul %1, %2, %cst {dimension_numbers = #tpu.dot_dimension_numbers<[1], [0], [0], [1], [0, 0, 1, 1], [], []>} : vector<8x800xbf16>, vector<800x128xbf16>, vector<8x128xf32> -> vector<8x128xf32>
    %c0_3 = arith.constant 0 : index
    %c0_4 = arith.constant 0 : index
    %4 = vector.load %arg3[%c0_3, %c0_4] : memref<1x128xf32, #tpu.memory_space<vmem>>, vector<1x128xf32>
    %5 = vector.broadcast %4 : vector<1x128xf32> to vector<8x128xf32>
    %6 = arith.addf %3, %5 : vector<8x128xf32>
    %cst_5 = arith.constant 0.000000e+00 : f32
    %7 = vector.broadcast %cst_5 : f32 to vector<8x128xf32>
    %8 = arith.maximumf %6, %7 : vector<8x128xf32>
    %9 = arith.truncf %8 : vector<8x128xf32> to vector<8x128xbf16>
    %c0_6 = arith.constant 0 : index
    %c0_7 = arith.constant 0 : index
    %10 = vector.load %arg4[%c0_6, %c0_7] : memref<128x128xbf16, #tpu.memory_space<vmem>>, vector<128x128xbf16>
    %cst_8 = arith.constant dense<0.000000e+00> : vector<8x128xf32>
    %11 = tpu.matmul %9, %10, %cst_8 {dimension_numbers = #tpu.dot_dimension_numbers<[1], [0], [0], [1], [0, 0, 1, 1], [], []>} : vector<8x128xbf16>, vector<128x128xbf16>, vector<8x128xf32> -> vector<8x128xf32>
    %c0_9 = arith.constant 0 : index
    %c0_10 = arith.constant 0 : index
    %12 = vector.load %arg5[%c0_9, %c0_10] : memref<1x128xf32, #tpu.memory_space<vmem>>, vector<1x128xf32>
    %13 = vector.broadcast %12 : vector<1x128xf32> to vector<8x128xf32>
    %14 = arith.addf %11, %13 : vector<8x128xf32>
    %cst_11 = arith.constant 0.000000e+00 : f32
    %15 = vector.broadcast %cst_11 : f32 to vector<8x128xf32>
    %16 = arith.maximumf %14, %15 : vector<8x128xf32>
    %17 = arith.truncf %16 : vector<8x128xf32> to vector<8x128xbf16>
    %c0_12 = arith.constant 0 : index
    %c0_13 = arith.constant 0 : index
    %18 = vector.load %arg6[%c0_12, %c0_13] : memref<128x128xbf16, #tpu.memory_space<vmem>>, vector<128x128xbf16>
    %cst_14 = arith.constant dense<0.000000e+00> : vector<8x128xf32>
    %19 = tpu.matmul %17, %18, %cst_14 {dimension_numbers = #tpu.dot_dimension_numbers<[1], [0], [0], [1], [0, 0, 1, 1], [], []>} : vector<8x128xbf16>, vector<128x128xbf16>, vector<8x128xf32> -> vector<8x128xf32>
    %c0_15 = arith.constant 0 : index
    %c0_16 = arith.constant 0 : index
    %20 = vector.load %arg7[%c0_15, %c0_16] : memref<1x128xf32, #tpu.memory_space<vmem>>, vector<1x128xf32>
    %21 = vector.broadcast %20 : vector<1x128xf32> to vector<8x128xf32>
    %22 = arith.addf %19, %21 : vector<8x128xf32>
    %23 = arith.truncf %22 : vector<8x128xf32> to vector<8x128xbf16>
    %c0_17 = arith.constant 0 : index
    %c0_18 = arith.constant 0 : index
    %24 = vector.load %arg8[%c0_17, %c0_18] : memref<8x128xbf16, #tpu.memory_space<vmem>>, vector<8x128xbf16>
    tpu.vector_store %arg8[%c0_17, %c0_18], %23 {strides = array<i32>} : memref<8x128xbf16, #tpu.memory_space<vmem>>, vector<8x128xbf16>,
    return
  }
  func.func @transform_0(%arg0: i32) -> (i32, i32) {
    %c0_i32 = arith.constant 0 : i32
    %c0_i32_0 = arith.constant 0 : i32
    return %arg0, %c0_i32 : i32, i32
  }
  func.func @transform_1(%arg0: i32) -> (i32, i32) {
    %c0_i32 = arith.constant 0 : i32
    %c0_i32_0 = arith.constant 0 : i32
    %c0_i32_1 = arith.constant 0 : i32
    return %c0_i32, %c0_i32_0 : i32, i32
  }
  func.func @transform_2(%arg0: i32) -> (i32, i32) {
    %c0_i32 = arith.constant 0 : i32
    %c0_i32_0 = arith.constant 0 : i32
    %c0_i32_1 = arith.constant 0 : i32
    return %c0_i32, %c0_i32_0 : i32, i32
  }
  func.func @transform_3(%arg0: i32) -> (i32, i32) {
    %c0_i32 = arith.constant 0 : i32
    %c0_i32_0 = arith.constant 0 : i32
    %c0_i32_1 = arith.constant 0 : i32
    return %c0_i32, %c0_i32_0 : i32, i32
  }
  func.func @transform_4(%arg0: i32) -> (i32, i32) {
    %c0_i32 = arith.constant 0 : i32
    %c0_i32_0 = arith.constant 0 : i32
    %c0_i32_1 = arith.constant 0 : i32
    return %c0_i32, %c0_i32_0 : i32, i32
  }
  func.func @transform_5(%arg0: i32) -> (i32, i32) {
    %c0_i32 = arith.constant 0 : i32
    %c0_i32_0 = arith.constant 0 : i32
    %c0_i32_1 = arith.constant 0 : i32
    return %c0_i32, %c0_i32_0 : i32, i32
  }
  func.func @transform_6(%arg0: i32) -> (i32, i32) {
    %c0_i32 = arith.constant 0 : i32
    %c0_i32_0 = arith.constant 0 : i32
    %c0_i32_1 = arith.constant 0 : i32
    return %c0_i32, %c0_i32_0 : i32, i32
  }
  func.func @transform_7(%arg0: i32) -> (i32, i32) {
    %c0_i32 = arith.constant 0 : i32
    %c0_i32_0 = arith.constant 0 : i32
    return %arg0, %c0_i32 : i32, i32
  }
}

</mosaic_0001>

<bundles_post_ra>
// kernel: predictor_forward.1
= control target key start
LH: loop header
LB: loop body
LE: loop exit
PB: predicated region body
PF: predicated region fallthrough
CT: control target
= control target key end

     0   :  { %12 = vsyncpa [#allocation3], 0  ;;  %s1405_s0 = inlined_call_operand.hbm [shape: f32[8,800], index: 0, kind: input, shape index: {}]   ;;  %s1406_s1 = inlined_call_operand.hbm [shape: bf16[800,128], index: 1, kind: input, shape index: {}]   ;;  %s1407_s2 = inlined_call_operand.vmem [shape: f32[1,128], index: 2, kind: input, shape index: {}]   ;;  %s1408_s3 = inlined_call_operand.hbm [shape: bf16[128,128], index: 3, kind: input, shape index: {}]   ;;  %s1409_s4 = inlined_call_operand.vmem [shape: f32[1,128], index: 4, kind: input, shape index: {}]   ;;  %s1410_s5 = inlined_call_operand.hbm [shape: bf16[128,128], index: 5, kind: input, shape index: {}]   ;;  %s1411_s6 = inlined_call_operand.vmem [shape: f32[1,128], index: 6, kind: input, shape index: {}]   ;;  %s1412_s7 = inlined_call_operand.hbm [shape: bf16[8,128], index: 7, kind: output, shape index: {}]  }
   0x1   :  { %13 = vsyncpa [#allocation6], 0 }
   0x2   :  { %14 = vsyncpa [#allocation9], 0 }
   0x3   :  { %15 = vsyncpa [#allocation4], 0  ;;  %s1299_s24 = smov [#allocation5]  }
   0x4   :  { %s31_s25 = sshll.u32 %s1299_s24, 4  ;;  %s32_s25 = int_to_ptr.vmem [resolvable:$true] %s31_s25 }
   0x5   :  { %s1199_s26 = scalar_lea.vmem %s32_s25, 6400  ;;  %p1204_p1 = scmp.lt.s32.totalorder %s32_s25, %s32_s25 }
   0x6   :  { %p1200_p0 = scmp.ne.s32.totalorder %s32_s25, %s1199_s26  ;;  %p1205_p2 = scmp.lt.s32.totalorder %s1199_s26, %s1199_s26 }
   0x8   :  { %p1206_p3 = por %p1205_p2, %p1204_p1 }
   0xa   :  { %p1207_p4 = pnand %p1206_p3, %p1200_p0 }
   0xc   :  { %1210 = shalt.err (!%p1207_p4)
}
   0xd   :  { %s1300_s27 = smov 64   ;;  %s1301_s28 = smov 4  }
   0xe   :  { %37 = dma.hbm_to_vmem [thread:$0]  %s1406_s1, 6400, %s32_s25, [#allocation6], %s1300_s27, %s1300_s27, %s1301_s28  }
   0xf   :  { %s1302_s8 = smov [#allocation2]   ;;  %s1303_s10 = smov [#allocation7]  }
  0x10   :  { %s22_s9 = sshll.u32 %s1302_s8, 4  ;;  %s45_s11 = sshll.u32 %s1303_s10, 4  ;;  %s23_s9 = int_to_ptr.vmem [resolvable:$true] %s22_s9  ;;  %s46_s11 = int_to_ptr.vmem [resolvable:$true] %s45_s11 }
  0x11   :  { %s1219_s12 = scalar_lea.vmem %s23_s9, 896  ;;  %p1224_p6 = scmp.lt.s32.totalorder %s23_s9, %s23_s9 }
  0x12   :  { %p1220_p5 = scmp.ne.s32.totalorder %s23_s9, %s1219_s12  ;;  %p1225_p7 = scmp.lt.s32.totalorder %s1219_s12, %s1219_s12 }
  0x14   :  { %p1226_p8 = por %p1225_p7, %p1224_p6 }
  0x16   :  { %p1227_p9 = pnand %p1226_p8, %p1220_p5 }
  0x18   :  { %1230 = shalt.err (!%p1227_p9)
}
  0x19   :  { %25 = dma.hbm_to_vmem [thread:$0]  %s1405_s0, 896, %s23_s9, [#allocation3]  }
  0x1a   :  { %s1239_s15 = scalar_lea.vmem %s46_s11, 1024  ;;  %p1244_p11 = scmp.lt.s32.totalorder %s46_s11, %s46_s11 }
  0x1b   :  { %p1240_p10 = scmp.ne.s32.totalorder %s46_s11, %s1239_s15  ;;  %p1245_p12 = scmp.lt.s32.totalorder %s1239_s15, %s1239_s15 }
  0x1d   :  { %p1246_p13 = por %p1245_p12, %p1244_p11 }
  0x1f   :  { %p1247_p0 = pnand %p1246_p13, %p1240_p10 }
  0x21   :  { %1250 = shalt.err (!%p1247_p0)
}
  0x22   :  { %51 = dma.hbm_to_vmem [thread:$0]  %s1408_s3, 1024, %s46_s11, [#allocation6], %s1300_s27, %s1300_s27, %s1301_s28  }
  0x23   :  { %s1304_s17 = smov [#allocation8]  }
  0x24   :  { %s59_s18 = sshll.u32 %s1304_s17, 4  ;;  %s60_s18 = int_to_ptr.vmem [resolvable:$true] %s59_s18 }
  0x25   :  { %s1259_s19 = scalar_lea.vmem %s60_s18, 1024  ;;  %p1264_p2 = scmp.lt.s32.totalorder %s60_s18, %s60_s18 }
  0x26   :  { %p1260_p1 = scmp.ne.s32.totalorder %s60_s18, %s1259_s19  ;;  %p1265_p3 = scmp.lt.s32.totalorder %s1259_s19, %s1259_s19 }
  0x28   :  { %p1266_p4 = por %p1265_p3, %p1264_p2 }
  0x2a   :  { %p1267_p5 = pnand %p1266_p4, %p1260_p1 }
  0x2c   :  { %1270 = shalt.err (!%p1267_p5)
}
  0x2d   :  { %65 = dma.hbm_to_vmem [thread:$0]  %s1410_s5, 1024, %s60_s18, [#allocation9], %s1300_s27, %s1300_s27, %s1301_s28  }
  0x2e   :  { %1291 = dma.done.wait [#allocation3], 896  }
  0x2f   :  { %1292 = vsyncadd [#allocation3], 4294966400 }
  0x30   :  { %1293 = dma.done.wait [#allocation6], 7424  }
  0x31   :  { %1294 = vsyncadd [#allocation6], 4294959872 }
  0x32   :  { %1295 = dma.done.wait [#allocation9], 1024  }
  0x33   :  { %1296 = vsyncadd [#allocation9], 4294966272  ;;  %v1125_v0 = vld [vmem:[#allocation5 + $0x78] sm:$0xff]   ;;  %v1129_v4 = vld [vmem:[#allocation5 + $0x70] sm:$0xff]   ;;  %v1305_v44 = vmov 0.0   ;;  %vm1306_vm0 = vmmov 0  }
  0x34   :  { %v1126_v1 = vld [vmem:[#allocation5 + $0x38] sm:$0xff]   ;;  %981 = vmatprep.subr.bf16.mxu0 %v1125_v0  ;;  %v1130_v5 = vld [vmem:[#allocation5 + $0x30] sm:$0xff]   ;;  %v1133_v8 = vld [vmem:[#allocation5 + $0x68] sm:$0xff]   ;;  %vm502_vm1 = vcmask 261120   ;;  %s1307_s24 = smov [#allocation10]  }
  0x35   :  { %v1127_v2 = vld [vmem:[#allocation5 + $0xf8] sm:$0xff]   ;;  %982 = vmatpush3.bf16.msra.mxu0 %v1126_v1  ;;  %v1131_v6 = vld [vmem:[#allocation5 + $0xf0] sm:$0xff]   ;;  %v1134_v9 = vld [vmem:[#allocation5 + $0x28] sm:$0xff]   ;;  %s900_s25 = sshll.u32 %s1307_s24, 4  ;;  %s901_s25 = int_to_ptr.vmem [resolvable:$true] %s900_s25 }
  0x36   :  { %v1128_v3 = vld [vmem:[#allocation5 + $0xb8] sm:$0xff]   ;;  %1003 = vmatprep.subr.bf16.mxu1 %v1127_v2  ;;  %983 = vmatprep.subr.bf16.mxu0 %v1129_v4  ;;  %v1132_v7 = vld [vmem:[#allocation5 + $0xb0] sm:$0xff]   ;;  %v1135_v10 = vld [vmem:[#allocation5 + $0xe8] sm:$0xff]   ;;  %p1276_p7 = scmp.lt.s32.totalorder %s901_s25, %s901_s25 }
  0x37   :  { %1004 = vmatpush3.bf16.msra.mxu1 %v1128_v3  ;;  %v1136_v11 = vld [vmem:[#allocation5 + $0xa8] sm:$0xff]   ;;  %v1137_v12 = vld [vmem:[#allocation5 + $0x60] sm:$0xff]   ;;  %v1141_v16 = vld [vmem:[#allocation5 + $0x58] sm:$0xff]  }
  0x38   :  { %1005 = vmatprep.subr.bf16.mxu1 %v1131_v6  ;;  %v1138_v13 = vld [vmem:[#allocation5 + $0x20] sm:$0xff]   ;;  %v1142_v17 = vld [vmem:[#allocation5 + $0x18] sm:$0xff]   ;;  %v1145_v20 = vld [vmem:[#allocation5 + $0x50] sm:$0xff]  }
  0x39   :  { %984 = vmatpush3.bf16.msra.mxu0 %v1130_v5  ;;  %v1139_v14 = vld [vmem:[#allocation5 + $0xe0] sm:$0xff]   ;;  %v1143_v18 = vld [vmem:[#allocation5 + $0xd8] sm:$0xff]   ;;  %v1146_v21 = vld [vmem:[#allocation5 + $0x10] sm:$0xff]  }
  0x3a   :  { %985 = vmatprep.subr.bf16.mxu0 %v1133_v8  ;;  %v1140_v15 = vld [vmem:[#allocation5 + $0xa0] sm:$0xff]   ;;  %v1144_v19 = vld [vmem:[#allocation5 + $0x98] sm:$0xff]   ;;  %v1147_v22 = vld [vmem:[#allocation5 + $0xd0] sm:$0xff]  }
  0x3b   :  { %1006 = vmatpush3.bf16.msra.mxu1 %v1132_v7  ;;  %v1148_v23 = vld [vmem:[#allocation5 + $0x90] sm:$0xff]   ;;  %v1149_v24 = vld [vmem:[#allocation5 + $0x48] sm:$0xff]   ;;  %v1153_v28 = vld [vmem:[#allocation5 + $0x40] sm:$0xff]  }
  0x3c   :  { %1007 = vmatprep.subr.bf16.mxu1 %v1135_v10  ;;  %v1150_v25 = vld [vmem:[#allocation5 + $0x8] sm:$0xff]   ;;  %v1154_v29 = vld [vmem:[#allocation5] sm:$0xff]   ;;  %v82_v31 = vld [vmem:[#allocation2 + $0x8] sm:$0xff] }
  0x3d   :  { %986 = vmatpush3.bf16.msra.mxu0 %v1134_v9  ;;  %v1151_v26 = vld [vmem:[#allocation5 + $0xc8] sm:$0xff]   ;;  %v1155_v30 = vld [vmem:[#allocation5 + $0xc0] sm:$0xff]   ;;  %v89_v32 = vpack.c.bf16 %v82_v31, %v82_v31  ;;  %v1157_v36 = vld [vmem:[#allocation5 + $0x178] sm:$0xff]  }
  0x3e   :  { %987 = vmatprep.subr.bf16.mxu0 %v1137_v12  ;;  %v1152_v27 = vld [vmem:[#allocation5 + $0x88] sm:$0xff]   ;;  %v1156_v33 = vld [vmem:[#allocation5 + $0x80] sm:$0xff]   ;;  %v1158_v39 = vld [vmem:[#allocation5 + $0x138] sm:$0xff]  }
  0x3f   :  { %1008 = vmatpush3.bf16.msra.mxu1 %v1136_v11  ;;  %v81_v34 = vld [vmem:[#allocation2] sm:$0xff]  ;;  %v84_v37 = vld [vmem:[#allocation2 + $0x18] sm:$0xff]  ;;  %538 = vmatprep.mubr.bf16.mxu0 %v89_v32  ;;  %v83_v40 = vld [vmem:[#allocation2 + $0x10] sm:$0xff] }
  0x40   :  { %1009 = vmatprep.subr.bf16.mxu1 %v1139_v14  ;;  %v88_v35 = vpack.c.bf16 %v81_v34, %v81_v34  ;;  %v91_v38 = vpack.c.bf16 %v84_v37, %v84_v37  ;;  %v90_v41 = vpack.c.bf16 %v83_v40, %v83_v40  ;;  %v1159_v42 = vld [vmem:[#allocation5 + $0x170] sm:$0xff]   ;;  %v1161_v45 = vld [vmem:[#allocation5 + $0x168] sm:$0xff]   ;;  %v1163_v47 = vld [vmem:[#allocation5 + $0x160] sm:$0xff]  }
  0x41   :  { %988 = vmatpush3.bf16.msra.mxu0 %v1138_v13  ;;  %v1160_v43 = vld [vmem:[#allocation5 + $0x130] sm:$0xff]   ;;  %v1162_v46 = vld [vmem:[#allocation5 + $0x128] sm:$0xff]   ;;  %v1164_v48 = vld [vmem:[#allocation5 + $0x120] sm:$0xff]  }
  0x42   :  { %989 = vmatprep.subr.bf16.mxu0 %v1141_v16  ;;  %578 = vmatprep.mubr.bf16.mxu1 %v91_v38  ;;  %v1165_v49 = vld [vmem:[#allocation5 + $0x158] sm:$0xff]   ;;  %v1171_v51 = vld [vmem:[#allocation5 + $0x188] sm:$0xff]   ;;  %v1167_v52 = vld [vmem:[#allocation5 + $0x150] sm:$0xff]  }
  0x43   :  { %1010 = vmatpush3.bf16.msra.mxu1 %v1140_v15  ;;  %v1166_v50 = vld [vmem:[#allocation5 + $0x118] sm:$0xff]   ;;  %v1168_v53 = vld [vmem:[#allocation5 + $0x110] sm:$0xff]   ;;  %v1169_v54 = vld [vmem:[#allocation5 + $0x148] sm:$0xff]  }
  0x44   :  { %1011 = vmatprep.subr.bf16.mxu1 %v1143_v18  ;;  %v1174_v55 = vld [vmem:[#allocation5 + $0x180] sm:$0xff]   ;;  %v86_v56 = vld [vmem:[#allocation2 + $0x28] sm:$0xff]  ;;  %v87_v58 = vld [vmem:[#allocation2 + $0x30] sm:$0xff] }
  0x45   :  { %990 = vmatpush3.bf16.msra.mxu0 %v1142_v17  ;;  %v93_v57 = vpack.c.bf16 %v86_v56, %v86_v56  ;;  %v94_v59 = vpack.c.bf16 %v87_v58, %v87_v58  ;;  %v1170_v60 = vld [vmem:[#allocation5 + $0x108] sm:$0xff]   ;;  %v1172_v61 = vld [vmem:[#allocation5 + $0x140] sm:$0xff]   ;;  %v1177_v3 = vld [vmem:[#allocation7 + $0x28] sm:$0xff]  }
  0x46   :  { %991 = vmatprep.subr.bf16.mxu0 %v1145_v20  ;;  %v1173_v62 = vld [vmem:[#allocation5 + $0x100] sm:$0xff]   ;;  %v85_v63 = vld [vmem:[#allocation2 + $0x20] sm:$0xff]  ;;  %v1178_v4 = vld [vmem:[#allocation7 + $0x20] sm:$0xff]  }
  0x47   :  { %1012 = vmatpush3.bf16.msra.mxu1 %v1144_v19  ;;  %v92_v0 = vpack.c.bf16 %v85_v63, %v85_v63  ;;  %v1175_v1 = vld [vmem:[#allocation7 + $0x38] sm:$0xff]   ;;  %v1176_v2 = vld [vmem:[#allocation7 + $0x30] sm:$0xff]   ;;  %v1181_v7 = vld [vmem:[#allocation7 + $0x8] sm:$0xff]  }
  0x48   :  { %1013 = vmatprep.subr.bf16.mxu1 %v1147_v22  ;;  %v1179_v5 = vld [vmem:[#allocation7 + $0x18] sm:$0xff]   ;;  %v1180_v6 = vld [vmem:[#allocation7 + $0x10] sm:$0xff]   ;;  %v1182_v8 = vld [vmem:[#allocation7] sm:$0xff]  }
  0x49   :  { %992 = vmatpush3.bf16.msra.mxu0 %v1146_v21  ;;  %v1183_v9 = vld [vmem:[#allocation8 + $0x38] sm:$0xff]   ;;  %v1184_v10 = vld [vmem:[#allocation8 + $0x30] sm:$0xff]   ;;  %v1185_v11 = vld [vmem:[#allocation8 + $0x28] sm:$0xff]  }
  0x4a   :  { %993 = vmatprep.subr.bf16.mxu0 %v1149_v24  ;;  %v1186_v12 = vld [vmem:[#allocation8 + $0x20] sm:$0xff]   ;;  %v1187_v13 = vld [vmem:[#allocation8 + $0x18] sm:$0xff]   ;;  %v1188_v14 = vld [vmem:[#allocation8 + $0x10] sm:$0xff]  }
  0x4b   :  { %1014 = vmatpush3.bf16.msra.mxu1 %v1148_v23 }
  0x4c   :  { %1015 = vmatprep.subr.bf16.mxu1 %v1151_v26 }
  0x4d   :  { %994 = vmatpush3.bf16.msra.mxu0 %v1150_v25 }
  0x4e   :  { %995 = vmatprep.subr.bf16.mxu0 %v1153_v28 }
  0x4f   :  { %1016 = vmatpush3.bf16.msra.mxu1 %v1152_v27  ;;  %v911_v27 = vld [vmem:[%s1407_s2] ss:$0 sm:$0xff] }
  0x50   :  { %1017 = vmatprep.subr.bf16.mxu1 %v1155_v30 }
  0x51   :  { %996 = vmatpush3.bf16.msra.mxu0 %v1154_v29 }
  0x52   :  { %1025 = vmatprep.subr.bf16.mxu0 %v1157_v36 }
  0x53   :  { %1018 = vmatpush3.bf16.msra.mxu1 %v1156_v33 }
  0x54   :  { %539 = vmatmul.mubr.bf16.vlgmr.msra.gmra.mxu0 %v88_v35  ;;  %1068 = vmatprep.subr.bf16.mxu1 %v1305_v44 }
  0x55   :  { %1026 = vmatpush3.bf16.msra.mxu0 %v1158_v39  ;;  %618 = vmatprep.mubr.bf16.mxu0 %v93_v57 }
  0x56   :  { %579 = vmatmul.mubr.bf16.vlgmr.msra.gmra.mxu1 %v90_v41  ;;  %1027 = vmatprep.subr.bf16.mxu0 %v1159_v42  ;;  %v1189_v41 = vld [vmem:[#allocation8 + $0x8] sm:$0xff]   ;;  %v1190_v42 = vld [vmem:[#allocation8] sm:$0xff]  }
  0x57   :  { %1072 = vmatprep.mubr.msk.bf16.mxu1 %vm1306_vm0, %v1305_v44  ;;  %1069 = vmatpush3.bf16.msra.mxu1 %v1171_v51 }
  0x58   :  { %1070 = vmatprep.subr.bf16.mxu1 %v1305_v44 }
  0x59   :  { %1028 = vmatpush3.bf16.msra.mxu0 %v1160_v43  ;;  %v963_v43 = vld [vmem:[%s1409_s4] ss:$0 sm:$0xff]  ;;  %s1271_s4 = scalar_lea.vmem %s901_s25, 64 }
  0x5a   :  { %1029 = vmatprep.subr.bf16.mxu0 %v1161_v45  ;;  %p1272_p6 = scmp.ne.s32.totalorder %s901_s25, %s1271_s4  ;;  %p1277_p8 = scmp.lt.s32.totalorder %s1271_s4, %s1271_s4 }
  0x5b   :  { %1071 = vmatpush3.bf16.msra.mxu1 %v1174_v55 }
  0x5c   :  { %1076 = vmatprep.subr.bf16.mxu1 %v1305_v44  ;;  %p1278_p9 = por %p1277_p8, %p1276_p7 }
  0x5d   :  { %1030 = vmatpush3.bf16.msra.mxu0 %v1162_v46 }
  0x5e   :  { %1031 = vmatprep.subr.bf16.mxu0 %v1163_v47  ;;  %1073 = vmatmul.mubr.msk.bf16.vlgmr.msra.gmra.mxu1 %vm502_vm1, %v94_v59  ;;  %p1279_p10 = pnand %p1278_p9, %p1272_p6 }
  0x5f   :  { %1092 = vmatprep.mubr.msk.bf16.mxu1 %vm1306_vm0, %v1305_v44  ;;  %1077 = vmatpush3.bf16.msra.mxu1 %v1175_v1 }
  0x60   :  { %1078 = vmatprep.subr.bf16.mxu1 %v1305_v44 }
  0x61   :  { %1032 = vmatpush3.bf16.msra.mxu0 %v1164_v48 }
  0x62   :  { %1033 = vmatprep.subr.bf16.mxu0 %v1165_v49 }
  0x63   :  { %1079 = vmatpush3.bf16.msra.mxu1 %v1176_v2 }
  0x64   :  { %1080 = vmatprep.subr.bf16.mxu1 %v1305_v44 }
  0x65   :  { %1034 = vmatpush3.bf16.msra.mxu0 %v1166_v50 }
  0x66   :  { %1035 = vmatprep.subr.bf16.mxu0 %v1167_v52  ;;  %v972_v52 = vld [vmem:[%s1411_s6] ss:$0 sm:$0xff] }
  0x67   :  { %1081 = vmatpush3.bf16.msra.mxu1 %v1177_v3 }
  0x68   :  { %1082 = vmatprep.subr.bf16.mxu1 %v1305_v44 }
  0x69   :  { %1036 = vmatpush3.bf16.msra.mxu0 %v1168_v53 }
  0x6a   :  { %1037 = vmatprep.subr.bf16.mxu0 %v1169_v54 }
  0x6b   :  { %1083 = vmatpush3.bf16.msra.mxu1 %v1178_v4 }
  0x6c   :  { %1084 = vmatprep.subr.bf16.mxu1 %v1305_v44 }
  0x6d   :  { %1038 = vmatpush3.bf16.msra.mxu0 %v1170_v60 }
  0x6e   :  { %1039 = vmatprep.subr.bf16.mxu0 %v1172_v61 }
  0x6f   :  { %1085 = vmatpush3.bf16.msra.mxu1 %v1179_v5 }
  0x70   :  { %1086 = vmatprep.subr.bf16.mxu1 %v1305_v44 }
  0x71   :  { %1040 = vmatpush3.bf16.msra.mxu0 %v1173_v62 }
  0x72   :  { %1096 = vmatprep.subr.bf16.mxu0 %v1305_v44 }
  0x73   :  { %1087 = vmatpush3.bf16.msra.mxu1 %v1180_v6 }
  0x74   :  { %619 = vmatmul.mubr.bf16.vlgmr.msra.gmra.mxu0 %v92_v0  ;;  %1088 = vmatprep.subr.bf16.mxu1 %v1305_v44 }
  0x75   :  { %1112 = vmatprep.mubr.msk.bf16.mxu0 %vm1306_vm0, %v1305_v44  ;;  %1097 = vmatpush3.bf16.msra.mxu0 %v1183_v9 }
  0x76   :  { %1098 = vmatprep.subr.bf16.mxu0 %v1305_v44 }
  0x77   :  { %1089 = vmatpush3.bf16.msra.mxu1 %v1181_v7 }
  0x78   :  { %1090 = vmatprep.subr.bf16.mxu1 %v1305_v44 }
  0x79   :  { %1099 = vmatpush3.bf16.msra.mxu0 %v1184_v10 }
  0x7a   :  { %1100 = vmatprep.subr.bf16.mxu0 %v1305_v44 }
  0x7b   :  { %1091 = vmatpush3.bf16.msra.mxu1 %v1182_v8 }
  0x7d   :  { %1101 = vmatpush3.bf16.msra.mxu0 %v1185_v11 }
  0x7e   :  { %1102 = vmatprep.subr.bf16.mxu0 %v1305_v44 }
  0x81   :  { %1103 = vmatpush3.bf16.msra.mxu0 %v1186_v12 }
  0x82   :  { %1104 = vmatprep.subr.bf16.mxu0 %v1305_v44 }
  0x85   :  { %1105 = vmatpush3.bf16.msra.mxu0 %v1187_v13 }
  0x86   :  { %1106 = vmatprep.subr.bf16.mxu0 %v1305_v44 }
  0x89   :  { %1107 = vmatpush3.bf16.msra.mxu0 %v1188_v14 }
  0x8a   :  { %1108 = vmatprep.subr.bf16.mxu0 %v1305_v44 }
  0x8d   :  { %1109 = vmatpush3.bf16.msra.mxu0 %v1189_v41 }
  0x8e   :  { %1110 = vmatprep.subr.bf16.mxu0 %v1305_v44 }
  0x91   :  { %1111 = vmatpush3.bf16.msra.mxu0 %v1190_v42 }
 0x114   :  { %v997_v15 = vpop.f32.mrf.mxu0 }
 0x116   :  { %v998_v16 = vpop.f32.mrf.mxu0  ;;  %v1019_v17 = vpop.f32.mrf.mxu1 }
 0x117   :  { %v999_v26 = vadd.f32 %v998_v16, %v997_v15 }
 0x118   :  { %v1000_v18 = vpop.f32.mrf.mxu0  ;;  %v1020_v19 = vpop.f32.mrf.mxu1 }
 0x119   :  { %v541_v29 = vadd.f32 %v999_v26, %v911_v27  ;;  %v1021_v30 = vadd.f32 %v1020_v19, %v1019_v17 }
 0x11a   :  { %v1001_v20 = vpop.f32.mrf.mxu0  ;;  %v1022_v21 = vpop.f32.mrf.mxu1 }
 0x11b   :  { %v581_v33 = vadd.f32 %v1021_v30, %v541_v29 }
 0x11c   :  { %v1023_v22 = vpop.f32.mrf.mxu1 }
 0x11e   :  { %v660_v23 = vpop.f32.mrf.mxu1 }
 0x120   :  { %v1074_v24 = vpop.f32.mrf.mxu1 }
 0x122   :  { %v663_v25 = vpop.f32.mrf.mxu1 }
 0x124   :  { %v1075_v28 = vpop.f32.mrf.mxu1 }
 0x134   :  { %v1041_v31 = vpop.f32.mrf.mxu0 }
 0x136   :  { %v1042_v32 = vpop.f32.mrf.mxu0 }
 0x137   :  { %v1043_v34 = vadd.f32 %v1042_v32, %v1041_v31 }
 0x138   :  { %v1044_v35 = vpop.f32.mrf.mxu0 }
 0x139   :  { %v621_v36 = vadd.f32 %v1043_v34, %v581_v33 }
 0x13a   :  { %v1045_v37 = vpop.f32.mrf.mxu0 }
 0x13b   :  { %v661_v38 = vadd.f32 %v660_v23, %v621_v36 }
 0x13d   :  { %v666_v39 = vmax.f32 %v661_v38, 0.0 }
 0x13f   :  { %v667_v40 = vpack.c.bf16 %v666_v39, %v666_v39 }
 0x141   :  { %1093 = vmatmul.mubr.bf16.vlgmr.msra.gmra.mxu1 %v667_v40 }
 0x201   :  { %v773_v45 = vpop.f32.mrf.mxu1 }
 0x202   :  { %v774_v46 = vadd.f32 %v963_v43, %v773_v45 }
 0x203   :  { %v1094_v47 = vpop.f32.mrf.mxu1 }
 0x204   :  { %v779_v48 = vmax.f32 %v774_v46, 0.0 }
 0x205   :  { %v776_v49 = vpop.f32.mrf.mxu1 }
 0x206   :  { %v780_v50 = vpack.c.bf16 %v779_v48, %v779_v48 }
 0x207   :  { %v1095_v51 = vpop.f32.mrf.mxu1 }
 0x208   :  { %1113 = vmatmul.mubr.bf16.vlgmr.msra.gmra.mxu0 %v780_v50 }
 0x2c8   :  { %v886_v53 = vpop.f32.mrf.mxu0 }
 0x2c9   :  { %v887_v44 = vadd.f32 %v972_v52, %v886_v53 }
 0x2ca   :  { %v1114_v54 = vpop.f32.mrf.mxu0 }
 0x2cb   :  { %v892_v55 = vpack.c.bf16 %v887_v44, %v887_v44 }
 0x2cc   :  { %v889_v56 = vpop.f32.mrf.mxu0 }
 0x2cd   :  { %893 = vst [vmem:[#allocation10] sm:$0xf] %v892_v55 }
 0x2ce   :  { %v1115_v57 = vpop.f32.mrf.mxu0 }
 0x2cf   :  { %1282 = shalt.err (!%p1279_p10)
}
 0x2d0   :  { %903 = dma.vmem_to_hbm [thread:$0]  %s901_s25, 64, %s1412_s7, [#allocation4]  }
 0x2d1   :  { %1297 = dma.done.wait [#allocation4], 64  }
 0x2d2   :  { %1298 = vsyncadd [#allocation4], 4294967232 }
 0x2d3   :  { %907 = vsyncpa [#allocation3], 1 }
 0x2d4   :  { %908 = vsyncpa [#allocation6], 1 }
 0x2d5   :  { %909 = vsyncpa [#allocation9], 1 }
 0x2d6   :  { %910 = vsyncpa [#allocation4], 1 }

</bundles_post_ra>
